<compile_context>
chip_gen: v6e
topology: v6e:2x2x1
jax: 0.10.0
libtpu: 0.0.40
codegen_flags: <defaults>
</compile_context>

<pallas_src>
import functools

import jax
import jax.numpy as jnp
from jax.experimental import pallas as pl
from jax.experimental.pallas import tpu as pltpu


def _dsc_fused_kernel(x_ref, wf_ref, b_ref, o_ref, cols_ref, *, k, c_in_pad, f_out):
    # x_ref   : (C_in_pad, F_in)          flat lane-dense input (halo folded in)
    # wf_ref  : (C_out_pad, k*C_in_pad)   fused depthwise*pointwise weights
    # b_ref   : (C_out_pad, 1)            pointwise bias
    # o_ref   : (C_out_pad, F_out)        F_out multiple of 128 -> unmasked stores
    # cols_ref: (k*C_in_pad, F_out)       VMEM scratch: im2col matrix
    #
    # Build im2col from k static shifted slices of the flat input:
    #   cols[j*C_in_pad + c, p] = x_flat[c, p + j]
    # Row ranges are multiples of 8 (sublane-tile aligned), width is full 128-lane.
    for j in range(k):  # k is small & static -> unrolled
        cols_ref[j * c_in_pad:(j + 1) * c_in_pad, :] = x_ref[:, j:j + f_out]

    # Single fused matmul (depthwise + pointwise), f32 accumulation, bias, ReLU.
    acc = jnp.dot(wf_ref[...], cols_ref[...], preferred_element_type=jnp.float32)
    o_ref[...] = jnp.maximum(acc + b_ref[...], 0.0)


def depthwise_separable_conv(x, w_dw, w_pw, bias, k):
    """x: (N, C_in, L) f32.  w_dw: (C_in, 1, k).  w_pw: (C_out, C_in, 1).  bias: (C_out,)."""
    n, c_in, l = x.shape
    c_out = w_pw.shape[0]
    pad = k // 2
    l_pad = l + 2 * pad            # per-element halo-padded length
    l_out = l_pad - k + 1          # per-element output length (== l for odd k)

    # Pad channel axes to the sublane tile (8) so every in-kernel scratch write is a
    # full, aligned sublane tile; padded channels are zero -> contribute 0 to the dot.
    c_in_pad = pl.cdiv(c_in, 8) * 8
    c_out_pad = pl.cdiv(c_out, 8) * 8

    # Lane-dense flat layout: each batch element occupies l_pad consecutive lanes
    # (its k//2 zero halo included); the whole axis is padded up to a multiple of
    # 128 lanes so the output block is a full, unmasked (C_out_pad, F_out) slab.
    f_out = pl.cdiv(n * l_pad, 128) * 128
    f_in = f_out + k - 1

    x_t = jnp.transpose(x, (1, 0, 2)).astype(jnp.float32)                 # (C_in, N, L)
    x_t = jnp.pad(x_t, ((0, c_in_pad - c_in), (0, 0), (pad, pad)))        # chan + halo pad
    x_flat = x_t.reshape(c_in_pad, n * l_pad)                             # (C_in_pad, N*l_pad)
    x_flat = jnp.pad(x_flat, ((0, 0), (0, f_in - n * l_pad)))             # (C_in_pad, F_in)

    wdw2 = w_dw.reshape(c_in, k).astype(jnp.float32)                      # (C_in, k)
    wpw2 = w_pw.reshape(c_out, c_in).astype(jnp.float32)                  # (C_out, C_in)
    # W_fused[o, j, c] = wpw[o, c] * wdw[c, j]
    w_fused = wpw2[:, None, :] * wdw2.T[None, :, :]                       # (C_out, k, C_in)
    w_fused = jnp.pad(
        w_fused, ((0, c_out_pad - c_out), (0, 0), (0, c_in_pad - c_in)))
    w_fused = w_fused.reshape(c_out_pad, k * c_in_pad)                    # (C_out_pad, k*C_in_pad)

    b2 = jnp.pad(bias.astype(jnp.float32), (0, c_out_pad - c_out)).reshape(c_out_pad, 1)

    kern = functools.partial(
        _dsc_fused_kernel, k=k, c_in_pad=c_in_pad, f_out=f_out)

    y_flat = pl.pallas_call(
        kern,
        out_shape=jax.ShapeDtypeStruct((c_out_pad, f_out), jnp.float32),
        grid=(1,),  # whole batch in a single grid step
        in_specs=[
            pl.BlockSpec((c_in_pad, f_in), lambda i: (0, 0)),
            pl.BlockSpec((c_out_pad, k * c_in_pad), lambda i: (0, 0)),
            pl.BlockSpec((c_out_pad, 1), lambda i: (0, 0)),
        ],
        out_specs=pl.BlockSpec((c_out_pad, f_out), lambda i: (0, 0)),
        scratch_shapes=[pltpu.VMEM((k * c_in_pad, f_out), jnp.float32)],
        compiler_params=pltpu.CompilerParams(dimension_semantics=("arbitrary",)),
    )(x_flat, w_fused, b2)

    # Un-flatten: flat lane position nn*l_pad + ll holds batch nn, output position ll.
    y = y_flat[:c_out, :n * l_pad].reshape(c_out, n, l_pad)[:, :, :l_out]
    return jnp.transpose(y, (1, 0, 2))                                    # (N, C_out, L_out)


def _reference(x, w_dw, w_pw, bias, k):
    # Pure-JAX reference matching F.relu(pointwise(depthwise(x))).
    pad = k // 2
    dw = jax.lax.conv_general_dilated(
        x, w_dw, window_strides=(1,), padding=[(pad, pad)],
        feature_group_count=x.shape[1], dimension_numbers=("NCH", "OIH", "NCH"))
    pw = jax.lax.conv_general_dilated(
        dw, w_pw, window_strides=(1,), padding=[(0, 0)],
        dimension_numbers=("NCH", "OIH", "NCH")) + bias[None, :, None]
    return jnp.maximum(pw, 0.0)


if __name__ == "__main__":
    # Module config: num_inchannel=4, num_outchannel=8, k=5, bias=True.
    N, C_IN, C_OUT, L, K = 2, 4, 8, 16, 5

    key = jax.random.PRNGKey(0)
    k1, k2, k3, k4 = jax.random.split(key, 4)
    x = jax.random.normal(k1, (N, C_IN, L), dtype=jnp.float32)
    # Deterministic parameter init (shapes follow nn.Conv1d in __init__).
    w_dw = jax.random.normal(k2, (C_IN, 1, K), dtype=jnp.float32) * 0.3
    w_pw = jax.random.normal(k3, (C_OUT, C_IN, 1), dtype=jnp.float32) * 0.3
    bias = jax.random.normal(k4, (C_OUT,), dtype=jnp.float32) * 0.1

    out = depthwise_separable_conv(x, w_dw, w_pw, bias, K)
    out = jax.block_until_ready(out)

    ref = _reference(x, w_dw, w_pw, bias, K)
    assert out.shape == (N, C_OUT, L), out.shape
    # Fused-weight form changes summation order slightly -> modest f32 tolerance.
    assert jnp.allclose(out, ref, atol=1e-4, rtol=1e-4), "mismatch vs reference"
    print("KERNEL_OK")
</pallas_src>

<mosaic_0001>
module attributes {stable_mosaic.version = 11 : i64} {
  func.func @_dsc_fused_kernel(%arg0: i32, %arg1: memref<8x132xf32, #tpu.memory_space<vmem>>, %arg2: memref<8x40xf32, #tpu.memory_space<vmem>>, %arg3: memref<8x1xf32, #tpu.memory_space<vmem>>, %arg4: memref<8x128xf32, #tpu.memory_space<vmem>>, %arg5: memref<40x128xf32, #tpu.memory_space<vmem>>) attributes {dimension_semantics = [#tpu.dimension_semantics<arbitrary>], iteration_bounds = array<i64: 1>, scalar_prefetch = 0 : i64, scratch_operands = 1 : i64, tpu.core_type = #tpu.core_type<tc>, window_params = [{pipeline_mode = #tpu.pipeline_mode<synchronous>, transform_indices = @transform_0, window_bounds = array<i64: 8, 132>}, {pipeline_mode = #tpu.pipeline_mode<synchronous>, transform_indices = @transform_1, window_bounds = array<i64: 8, 40>}, {pipeline_mode = #tpu.pipeline_mode<synchronous>, transform_indices = @transform_2, window_bounds = array<i64: 8, 1>}, {pipeline_mode = #tpu.pipeline_mode<synchronous>, transform_indices = @transform_3, window_bounds = array<i64: 8, 128>}]} {
    %c0 = arith.constant 0 : index
    %c0_0 = arith.constant 0 : index
    %0 = vector.load %arg1[%c0, %c0_0] : memref<8x132xf32, #tpu.memory_space<vmem>>, vector<8x128xf32>
    %c0_1 = arith.constant 0 : index
    %c0_2 = arith.constant 0 : index
    %1 = vector.load %arg5[%c0_1, %c0_2] : memref<40x128xf32, #tpu.memory_space<vmem>>, vector<8x128xf32>
    tpu.vector_store %arg5[%c0_1, %c0_2], %0 {strides = array<i32>} : memref<40x128xf32, #tpu.memory_space<vmem>>, vector<8x128xf32>,
    %c0_3 = arith.constant 0 : index
    %c1 = arith.constant 1 : index
    %2 = vector.load %arg1[%c0_3, %c1] : memref<8x132xf32, #tpu.memory_space<vmem>>, vector<8x128xf32>
    %c8 = arith.constant 8 : index
    %c0_4 = arith.constant 0 : index
    %3 = vector.load %arg5[%c8, %c0_4] : memref<40x128xf32, #tpu.memory_space<vmem>>, vector<8x128xf32>
    tpu.vector_store %arg5[%c8, %c0_4], %2 {strides = array<i32>} : memref<40x128xf32, #tpu.memory_space<vmem>>, vector<8x128xf32>,
    %c0_5 = arith.constant 0 : index
    %c2 = arith.constant 2 : index
    %4 = vector.load %arg1[%c0_5, %c2] : memref<8x132xf32, #tpu.memory_space<vmem>>, vector<8x128xf32>
    %c16 = arith.constant 16 : index
    %c0_6 = arith.constant 0 : index
    %5 = vector.load %arg5[%c16, %c0_6] : memref<40x128xf32, #tpu.memory_space<vmem>>, vector<8x128xf32>
    tpu.vector_store %arg5[%c16, %c0_6], %4 {strides = array<i32>} : memref<40x128xf32, #tpu.memory_space<vmem>>, vector<8x128xf32>,
    %c0_7 = arith.constant 0 : index
    %c3 = arith.constant 3 : index
    %6 = vector.load %arg1[%c0_7, %c3] : memref<8x132xf32, #tpu.memory_space<vmem>>, vector<8x128xf32>
    %c24 = arith.constant 24 : index
    %c0_8 = arith.constant 0 : index
    %7 = vector.load %arg5[%c24, %c0_8] : memref<40x128xf32, #tpu.memory_space<vmem>>, vector<8x128xf32>
    tpu.vector_store %arg5[%c24, %c0_8], %6 {strides = array<i32>} : memref<40x128xf32, #tpu.memory_space<vmem>>, vector<8x128xf32>,
    %c0_9 = arith.constant 0 : index
    %c4 = arith.constant 4 : index
    %8 = vector.load %arg1[%c0_9, %c4] : memref<8x132xf32, #tpu.memory_space<vmem>>, vector<8x128xf32>
    %c32 = arith.constant 32 : index
    %c0_10 = arith.constant 0 : index
    %9 = vector.load %arg5[%c32, %c0_10] : memref<40x128xf32, #tpu.memory_space<vmem>>, vector<8x128xf32>
    tpu.vector_store %arg5[%c32, %c0_10], %8 {strides = array<i32>} : memref<40x128xf32, #tpu.memory_space<vmem>>, vector<8x128xf32>,
    %c0_11 = arith.constant 0 : index
    %c0_12 = arith.constant 0 : index
    %10 = vector.load %arg2[%c0_11, %c0_12] : memref<8x40xf32, #tpu.memory_space<vmem>>, vector<8x40xf32>
    %c0_13 = arith.constant 0 : index
    %c0_14 = arith.constant 0 : index
    %11 = vector.load %arg5[%c0_13, %c0_14] : memref<40x128xf32, #tpu.memory_space<vmem>>, vector<40x128xf32>
    %cst = arith.constant dense<0.000000e+00> : vector<8x128xf32>
    %12 = tpu.matmul %10, %11, %cst {dimension_numbers = #tpu.dot_dimension_numbers<[1], [0], [0], [1], [0, 0, 1, 1], [], []>} : vector<8x40xf32>, vector<40x128xf32>, vector<8x128xf32> -> vector<8x128xf32>
    %c0_15 = arith.constant 0 : index
    %c0_16 = arith.constant 0 : index
    %13 = vector.load %arg3[%c0_15, %c0_16] : memref<8x1xf32, #tpu.memory_space<vmem>>, vector<8x1xf32>
    %14 = vector.broadcast %13 : vector<8x1xf32> to vector<8x128xf32>
    %15 = arith.addf %12, %14 : vector<8x128xf32>
    %cst_17 = arith.constant 0.000000e+00 : f32
    %16 = vector.broadcast %cst_17 : f32 to vector<8x128xf32>
    %17 = arith.maximumf %15, %16 : vector<8x128xf32>
    %c0_18 = arith.constant 0 : index
    %c0_19 = arith.constant 0 : index
    %18 = vector.load %arg4[%c0_18, %c0_19] : memref<8x128xf32, #tpu.memory_space<vmem>>, vector<8x128xf32>
    tpu.vector_store %arg4[%c0_18, %c0_19], %17 {strides = array<i32>} : memref<8x128xf32, #tpu.memory_space<vmem>>, vector<8x128xf32>,
    return
  }
  func.func @transform_0(%arg0: i32) -> (i32, i32) {
    %c0_i32 = arith.constant 0 : i32
    %c0_i32_0 = arith.constant 0 : i32
    %c0_i32_1 = arith.constant 0 : i32
    return %c0_i32, %c0_i32_0 : i32, i32
  }
  func.func @transform_1(%arg0: i32) -> (i32, i32) {
    %c0_i32 = arith.constant 0 : i32
    %c0_i32_0 = arith.constant 0 : i32
    %c0_i32_1 = arith.constant 0 : i32
    return %c0_i32, %c0_i32_0 : i32, i32
  }
  func.func @transform_2(%arg0: i32) -> (i32, i32) {
    %c0_i32 = arith.constant 0 : i32
    %c0_i32_0 = arith.constant 0 : i32
    %c0_i32_1 = arith.constant 0 : i32
    return %c0_i32, %c0_i32_0 : i32, i32
  }
  func.func @transform_3(%arg0: i32) -> (i32, i32) {
    %c0_i32 = arith.constant 0 : i32
    %c0_i32_0 = arith.constant 0 : i32
    %c0_i32_1 = arith.constant 0 : i32
    return %c0_i32, %c0_i32_0 : i32, i32
  }
}

</mosaic_0001>

<bundles_post_ra>
// kernel: tpu_custom_call.1
= control target key start
LH: loop header
LB: loop body
LE: loop exit
PB: predicated region body
PF: predicated region fallthrough
CT: control target
= control target key end

     0   :  { %8 = vsyncpa [#allocation4], 0  ;;  %s295_s0 = inlined_call_operand.hbm [shape: f32[8,132], index: 0, kind: input, shape index: {}]   ;;  %s296_s1 = inlined_call_operand.vmem [shape: f32[8,40], index: 1, kind: input, shape index: {}]   ;;  %s297_s2 = inlined_call_operand.vmem [shape: f32[8,1], index: 2, kind: input, shape index: {}]   ;;  %s298_s3 = inlined_call_operand.hbm [shape: f32[8,128], index: 3, kind: output, shape index: {}]  }
   0x1   :  { %9 = vsyncpa [#allocation5], 0  ;;  %s254_s12 = smov [#allocation3]  }
   0x2   :  { %s16_s13 = sshll.u32 %s254_s12, 4  ;;  %s17_s13 = int_to_ptr.vmem [resolvable:$true] %s16_s13 }
   0x3   :  { %s218_s14 = scalar_lea.vmem %s17_s13, 256  ;;  %p223_p1 = scmp.lt.s32.totalorder %s17_s13, %s17_s13 }
   0x4   :  { %p219_p0 = scmp.ne.s32.totalorder %s17_s13, %s218_s14  ;;  %p224_p2 = scmp.lt.s32.totalorder %s218_s14, %s218_s14 }
   0x6   :  { %p225_p3 = por %p224_p2, %p223_p1 }
   0x8   :  { %p226_p4 = pnand %p225_p3, %p219_p0 }
   0xa   :  { %229 = shalt.err (!%p226_p4)
}
   0xb   :  { %19 = dma.hbm_to_vmem [thread:$0]  %s295_s0, 256, %s17_s13, [#allocation4]  }
   0xc   :  { %250 = dma.done.wait [#allocation4], 256  }
   0xd   :  { %251 = vsyncadd [#allocation4], 4294967040  ;;  %v255_v0 = vmov 0.0   ;;  %v65_v1 = vld [vmem:[#allocation3] sm:$0xff]  ;;  %s256_s17 = smov 124   ;;  %s257_s18 = smov 125  }
   0xe   :  { %187 = vmatprep.subr.mxu0 %v255_v0  ;;  %69 = vrot.lane.b32.xlu0 %v65_v1, %s256_s17  ;;  %v66_v2 = vld [vmem:[#allocation3 + $0x8] sm:$0xff]  ;;  %vm258_vm0 = vmmov 0   ;;  %v259_v3 = vmov 0   ;;  %s260_s19 = smov 126   ;;  %s261_s0 = smov 127   ;;  %v83_v4 = vld [vmem:[%s297_s2] sm:$0xff] }
   0xf   :  { %57 = vrot.lane.b32.xlu1 %v65_v1, %s257_s18  ;;  %197 = vmatprep.mubr.msk.f32.mxu0 %vm258_vm0, %v255_v0  ;;  %vm73_vm1 = vcmask 1014784   ;;  %vm61_vm2 = vcmask 1022976   ;;  %vm49_vm3 = vcmask 1031168   ;;  %vm37_vm4 = vcmask 1039360   ;;  %v77_v17 = vld [vmem:[%s296_s1] sm:$0xff]  ;;  %s262_s23 = smov [#allocation6]  }
  0x10   :  { %209 = vset.pattern.permute.xlu0 %v259_v3  ;;  %vm89_vm5 = vcmask 326656   ;;  %s171_s24 = sshll.u32 %s262_s23, 4  ;;  %s172_s24 = int_to_ptr.vmem [resolvable:$true] %s171_s24 }
  0x11   :  { %s230_s25 = scalar_lea.vmem %s172_s24, 128  ;;  %p235_p6 = scmp.lt.s32.totalorder %s172_s24, %s172_s24 }
  0x12   :  { %71 = vrot.lane.b32.xlu0 %v66_v2, %s256_s17  ;;  %p231_p5 = scmp.ne.s32.totalorder %s172_s24, %s230_s25  ;;  %p236_p7 = scmp.lt.s32.totalorder %s230_s25, %s230_s25 }
  0x13   :  { %59 = vrot.lane.b32.xlu1 %v66_v2, %s257_s18 }
  0x14   :  { %p237_p8 = por %p236_p7, %p235_p6 }
  0x16   :  { %45 = vrot.lane.b32.xlu0 %v65_v1, %s260_s19  ;;  %p238_p9 = pnand %p237_p8, %p231_p5 }
  0x17   :  { %47 = vrot.lane.b32.xlu1 %v66_v2, %s260_s19 }
  0x1a   :  { %33 = vrot.lane.b32.xlu0 %v65_v1, %s261_s0 }
  0x1b   :  { %35 = vrot.lane.b32.xlu1 %v66_v2, %s261_s0 }
  0x1e   :  { %86 = vperm.xlu0 %209, %v83_v4  }
  0x80   :  { %v70_v5 = vpop.permute.xlu0 %69 }
  0x81   :  { %v58_v6 = vpop.permute.xlu1 %57 }
  0x84   :  { %v72_v7 = vpop.permute.xlu0 %71 }
  0x85   :  { %v60_v8 = vpop.permute.xlu1 %59  ;;  %v74_v9 = vsel %vm73_vm1, %v70_v5, %v72_v7 }
  0x86   :  { %188 = vmatpush3.msra.mxu0 %v74_v9  ;;  %v62_v10 = vsel %vm61_vm2, %v58_v6, %v60_v8 }
  0x87   :  { %189 = vmatprep.subr.mxu0 %v255_v0 }
  0x88   :  { %190 = vmatpush3.msra.mxu0 %v62_v10  ;;  %v46_v12 = vpop.permute.xlu0 %45 }
  0x89   :  { %v48_v11 = vpop.permute.xlu1 %47  ;;  %191 = vmatprep.subr.mxu0 %v255_v0 }
  0x8a   :  { %v50_v13 = vsel %vm49_vm3, %v46_v12, %v48_v11 }
  0x8b   :  { %192 = vmatpush3.msra.mxu0 %v50_v13 }
  0x8c   :  { %193 = vmatprep.subr.mxu0 %v255_v0  ;;  %v34_v15 = vpop.permute.xlu0 %33 }
  0x8d   :  { %v36_v14 = vpop.permute.xlu1 %35 }
  0x8e   :  { %v38_v16 = vsel %vm37_vm4, %v34_v15, %v36_v14 }
  0x8f   :  { %194 = vmatpush3.msra.mxu0 %v38_v16 }
  0x90   :  { %195 = vmatprep.subr.mxu0 %v255_v0 }
  0x91   :  { %196 = vmatpush3.msra.mxu0 %v65_v1 }
  0x92   :  { %198 = vmatmul.mubr.msk.f32.vlgmr.msra.gmra.mxu0 %vm89_vm5, %v77_v17 }
  0x99   :  { %v87_v18 = vpop.permute.xlu0 %86 }
 0x152   :  { %v159_v19 = vpop.f32.mrf.mxu0 }
 0x153   :  { %v160_v20 = vadd.f32 %v159_v19, %v87_v18 }
 0x154   :  { %v199_v21 = vpop.f32.mrf.mxu0 }
 0x155   :  { %v163_v22 = vmax.f32 %v160_v20, 0.0 }
 0x157   :  { %164 = vst [vmem:[#allocation6] sm:$0xff] %v163_v22 }
 0x158   :  { %241 = shalt.err (!%p238_p9)
}
 0x159   :  { %174 = dma.vmem_to_hbm [thread:$0]  %s172_s24, 128, %s298_s3, [#allocation5]  }
 0x15a   :  { %252 = dma.done.wait [#allocation5], 128  }
 0x15b   :  { %253 = vsyncadd [#allocation5], 4294967168 }
 0x15c   :  { %178 = vsyncpa [#allocation4], 1 }
 0x15d   :  { %179 = vsyncpa [#allocation5], 1 }

</bundles_post_ra>
